<compile_context>
chip_gen: v5e
topology: v5e:2x2
jax: 0.10.0
libtpu: 0.0.40
codegen_flags: <defaults>
</compile_context>

<pallas_src>
import functools

import jax
import jax.numpy as jnp
from jax.experimental import pallas as pl
from jax.experimental.pallas import tpu as pltpu


def _round_up(x, n):
    return ((x + n - 1) // n) * n


def _cosface_kernel(emb_ref, w_ref, label_ref, out_ref, *, m, s):
    """One (B tile, C tile) of the CosFace forward.

    emb_ref:   (TB, D)  f32   embeddings tile
    w_ref:     (D, TC)  bf16  streamed weight tile
    label_ref: (TB, 1)  int32 labels for this B tile (padded rows carry -1)
    out_ref:   (TB, TC) f32   scaled logits tile
    """
    TB, TC = out_ref.shape

    # --- l2_norm(embeddings, axis=1): rsqrt (EUP) + eps guard, f32 math ----
    emb = emb_ref[...].astype(jnp.float32)                       # (TB, D)
    inv_row = jax.lax.rsqrt(
        jnp.maximum(jnp.sum(emb * emb, axis=1, keepdims=True), 1e-12))
    emb_n = (emb * inv_row).astype(jnp.bfloat16)                 # MXU operand

    # --- l2_norm(kernel, axis=0) on this (D, TC) tile ----------------------
    w = w_ref[...].astype(jnp.float32)                           # (D, TC)
    inv_col = jax.lax.rsqrt(
        jnp.maximum(jnp.sum(w * w, axis=0, keepdims=True), 1e-12))
    w_n = (w * inv_col).astype(jnp.bfloat16)                     # MXU operand

    # --- cos_theta = emb_n @ w_n (bf16 x bf16 -> f32 accumulate), clamp ----
    cos_theta = jnp.dot(emb_n, w_n, preferred_element_type=jnp.float32)
    cos_theta = jnp.clip(cos_theta, -1.0, 1.0)                   # (TB, TC) f32

    # --- subtract m at the label column (rows with label != -1 only) -------
    # torch:  index = where(label != -1); cos_theta[index] -= m_hot
    # Implemented as a dense mask so every grid point stays independent.
    col0 = pl.program_id(1) * TC
    col_ids = jax.lax.broadcasted_iota(jnp.int32, (TB, TC), 1) + col0
    label = label_ref[...]                                       # (TB, 1) int32
    m_mask = (col_ids == label) & (label != -1)                  # (TB, TC)
    cos_theta = jnp.where(m_mask, cos_theta - m, cos_theta)

    out_ref[...] = cos_theta * s


def cosface(embeddings, label, weight, *, s=64.0, m=0.35,
            block_b=None, block_c=None):
    """Pallas forward of CosFace.

    embeddings: (B, D) float   batch of embeddings
    label:      (B,)   int32   class indices (-1 => no margin for that row)
    weight:     (D, C) float   the nn.Parameter `kernel` (in_features, out_features)
    returns scaled logits (B, C) float32
    """
    B, D = embeddings.shape
    Dw, C = weight.shape
    assert D == Dw, "embedding dim must match kernel's in_features"

    # --- tile-size selection (lane-dense C tiles, sublane-aligned B tiles) --
    B8 = _round_up(max(B, 8), 8)
    if block_b is None:
        block_b = min(256, B8)              # tile large batches at 256 rows
    block_b = _round_up(block_b, 8)
    B_pad = _round_up(B8, block_b)
    num_b_tiles = B_pad // block_b

    C128 = _round_up(C, 128)
    if block_c is None:
        block_c = min(1024, C128)           # large lane-dense tile by default
    block_c = _round_up(block_c, 128)
    C_pad = _round_up(C128, block_c)
    num_c_tiles = C_pad // block_c

    # --- host-side padding & dtype staging ----------------------------------
    # Embeddings stay f32 (small); the dominant operand W ships as bf16.
    emb = embeddings.astype(jnp.float32)
    if B_pad != B:
        emb = jnp.pad(emb, ((0, B_pad - B), (0, 0)))
    w = weight.astype(jnp.bfloat16)
    if C_pad != C:
        w = jnp.pad(w, ((0, 0), (0, C_pad - C)))
    lbl = label.astype(jnp.int32).reshape(B, 1)
    if B_pad != B:
        lbl = jnp.pad(lbl, ((0, B_pad - B), (0, 0)), constant_values=-1)

    kern = functools.partial(_cosface_kernel, m=float(m), s=float(s))

    out = pl.pallas_call(
        kern,
        out_shape=jax.ShapeDtypeStruct((B_pad, C_pad), jnp.float32),
        grid_spec=pltpu.PrefetchScalarGridSpec(
            num_scalar_prefetch=0,
            grid=(num_b_tiles, num_c_tiles),
            in_specs=[
                # embeddings tile for this B tile (constant across C tiles)
                pl.BlockSpec((block_b, D), lambda i, j: (i, 0)),
                # streamed (D, TC) weight tile, double-buffered by the pipeline
                pl.BlockSpec((D, block_c), lambda i, j: (0, j)),
                # labels for this B tile
                pl.BlockSpec((block_b, 1), lambda i, j: (i, 0)),
            ],
            out_specs=pl.BlockSpec((block_b, block_c), lambda i, j: (i, j)),
        ),
        compiler_params=pltpu.CompilerParams(
            # Every (B tile, C tile) is independent -> megacore-shard freely.
            dimension_semantics=("parallel", "parallel"),
            # > v5e/v6e scoped defaults, < v7x's 64 MiB physical VMEM.
            vmem_limit_bytes=48 * 1024 * 1024,
        ),
    )(emb, w, lbl)

    return out[:B, :C]


# ---------------------------------------------------------------------------
# Pure-JAX references for verification.
# ---------------------------------------------------------------------------
def _reference_f32(embeddings, label, weight, *, s=64.0, m=0.35):
    """Exact f32 mirror of the PyTorch forward."""
    emb_n = embeddings / jnp.sqrt(jnp.sum(embeddings ** 2, axis=1, keepdims=True))
    w_n = weight / jnp.sqrt(jnp.sum(weight ** 2, axis=0, keepdims=True))
    cos = jnp.clip(emb_n @ w_n, -1.0, 1.0)
    onehot = (jax.lax.broadcasted_iota(jnp.int32, cos.shape, 1) == label[:, None])
    onehot = onehot & (label[:, None] != -1)
    cos = jnp.where(onehot, cos - m, cos)
    return cos * s


def _reference_bf16(embeddings, label, weight, *, s=64.0, m=0.35):
    """Reference mirroring the kernel's numerics (bf16 W + bf16 MXU operands)."""
    emb = embeddings.astype(jnp.float32)
    inv_row = jax.lax.rsqrt(
        jnp.maximum(jnp.sum(emb * emb, axis=1, keepdims=True), 1e-12))
    emb_n = (emb * inv_row).astype(jnp.bfloat16)
    w = weight.astype(jnp.bfloat16).astype(jnp.float32)
    inv_col = jax.lax.rsqrt(
        jnp.maximum(jnp.sum(w * w, axis=0, keepdims=True), 1e-12))
    w_n = (w * inv_col).astype(jnp.bfloat16)
    cos = jnp.clip(jnp.dot(emb_n, w_n, preferred_element_type=jnp.float32),
                   -1.0, 1.0)
    onehot = (jax.lax.broadcasted_iota(jnp.int32, cos.shape, 1) == label[:, None])
    onehot = onehot & (label[:, None] != -1)
    cos = jnp.where(onehot, cos - m, cos)
    return cos * s


if __name__ == "__main__":
    # Small deterministic problem: B=8, in_features=32, out_features=128.
    B, in_features, out_features = 8, 32, 128
    s, m = 64.0, 0.35

    key = jax.random.PRNGKey(0)
    k_emb, k_w, k_lbl = jax.random.split(key, 3)

    embeddings = jax.random.normal(k_emb, (B, in_features), dtype=jnp.float32)
    # nn.init.normal_(self.kernel, std=0.01)
    weight = 0.01 * jax.random.normal(k_w, (in_features, out_features),
                                      dtype=jnp.float32)
    label = jax.random.randint(k_lbl, (B,), 0, out_features, dtype=jnp.int32)
    label = label.at[3].set(-1)   # exercise the `label != -1` filter path

    logits = cosface(embeddings, label, weight, s=s, m=m)
    logits = jax.block_until_ready(logits)

    ref_bf16 = _reference_bf16(embeddings, label, weight, s=s, m=m)
    ref_f32 = _reference_f32(embeddings, label, weight, s=s, m=m)

    # Primary check: numerically mirrored reference (same bf16 operand casts).
    assert jnp.allclose(logits, ref_bf16, atol=1e-2, rtol=1e-3), (
        "mismatch vs bf16-mirrored reference")
    # Sanity check vs the exact f32 reference (bf16 operand quantisation only).
    assert jnp.allclose(logits, ref_f32, atol=0.5, rtol=0.0), (
        "mismatch vs f32 reference")

    print("KERNEL_OK")
</pallas_src>

<mosaic_0001>
module attributes {stable_mosaic.version = 11 : i64} {
  func.func @_cosface_kernel(%arg0: i32, %arg1: i32, %arg2: memref<8x32xf32, #tpu.memory_space<vmem>>, %arg3: memref<32x128xbf16, #tpu.memory_space<vmem>>, %arg4: memref<8x1xi32, #tpu.memory_space<vmem>>, %arg5: memref<8x128xf32, #tpu.memory_space<vmem>>) attributes {dimension_semantics = [#tpu.dimension_semantics<parallel>, #tpu.dimension_semantics<parallel>], iteration_bounds = array<i64: 1, 1>, scalar_prefetch = 0 : i64, scratch_operands = 0 : i64, tpu.core_type = #tpu.core_type<tc>, window_params = [{transform_indices = @transform_0, window_bounds = array<i64: 8, 32>}, {transform_indices = @transform_1, window_bounds = array<i64: 32, 128>}, {transform_indices = @transform_2, window_bounds = array<i64: 8, 1>}, {transform_indices = @transform_3, window_bounds = array<i64: 8, 128>}]} {
    %c0 = arith.constant 0 : index
    %c0_0 = arith.constant 0 : index
    %0 = vector.load %arg2[%c0, %c0_0] : memref<8x32xf32, #tpu.memory_space<vmem>>, vector<8x32xf32>
    %1 = arith.mulf %0, %0 : vector<8x32xf32>
    %cst = arith.constant dense<0.000000e+00> : vector<8xf32>
    %2 = vector.multi_reduction <add>, %1, %cst [1] : vector<8x32xf32> to vector<8xf32>
    %3 = vector.shape_cast %2 : vector<8xf32> to vector<8x1xf32>
    %cst_1 = arith.constant 9.99999996E-13 : f32
    %4 = vector.broadcast %cst_1 : f32 to vector<8x1xf32>
    %5 = arith.maximumf %3, %4 : vector<8x1xf32>
    %6 = math.rsqrt %5 : vector<8x1xf32>
    %7 = vector.broadcast %6 : vector<8x1xf32> to vector<8x32xf32>
    %8 = arith.mulf %0, %7 : vector<8x32xf32>
    %9 = arith.truncf %8 : vector<8x32xf32> to vector<8x32xbf16>
    %c0_2 = arith.constant 0 : index
    %c0_3 = arith.constant 0 : index
    %10 = vector.load %arg3[%c0_2, %c0_3] : memref<32x128xbf16, #tpu.memory_space<vmem>>, vector<32x128xbf16>
    %11 = arith.extf %10 : vector<32x128xbf16> to vector<32x128xf32>
    %12 = arith.mulf %11, %11 : vector<32x128xf32>
    %cst_4 = arith.constant dense<0.000000e+00> : vector<128xf32>
    %13 = vector.multi_reduction <add>, %12, %cst_4 [0] : vector<32x128xf32> to vector<128xf32>
    %14 = vector.shape_cast %13 : vector<128xf32> to vector<1x128xf32>
    %cst_5 = arith.constant 9.99999996E-13 : f32
    %15 = vector.broadcast %cst_5 : f32 to vector<1x128xf32>
    %16 = arith.maximumf %14, %15 : vector<1x128xf32>
    %17 = math.rsqrt %16 : vector<1x128xf32>
    %18 = vector.broadcast %17 : vector<1x128xf32> to vector<32x128xf32>
    %19 = arith.mulf %11, %18 : vector<32x128xf32>
    %20 = arith.truncf %19 : vector<32x128xf32> to vector<32x128xbf16>
    %cst_6 = arith.constant dense<0.000000e+00> : vector<8x128xf32>
    %21 = tpu.matmul %9, %20, %cst_6 {dimension_numbers = #tpu.dot_dimension_numbers<[1], [0], [0], [1], [0, 0, 1, 1], [], []>} : vector<8x32xbf16>, vector<32x128xbf16>, vector<8x128xf32> -> vector<8x128xf32>
    %cst_7 = arith.constant -1.000000e+00 : f32
    %cst_8 = arith.constant 1.000000e+00 : f32
    %22 = vector.broadcast %cst_7 : f32 to vector<8x128xf32>
    %23 = arith.maximumf %22, %21 : vector<8x128xf32>
    %24 = vector.broadcast %cst_8 : f32 to vector<8x128xf32>
    %25 = arith.minimumf %24, %23 : vector<8x128xf32>
    %c128_i32 = arith.constant 128 : i32
    %26 = arith.muli %arg1, %c128_i32 : i32
    %27 = tpu.iota {dimensions = array<i32: 1>} : vector<8x128xi32>
    %28 = vector.broadcast %26 : i32 to vector<8x128xi32>
    %29 = arith.addi %27, %28 : vector<8x128xi32>
    %c0_9 = arith.constant 0 : index
    %c0_10 = arith.constant 0 : index
    %30 = vector.load %arg4[%c0_9, %c0_10] : memref<8x1xi32, #tpu.memory_space<vmem>>, vector<8x1xi32>
    %31 = vector.broadcast %30 : vector<8x1xi32> to vector<8x128xi32>
    %32 = arith.cmpi eq, %29, %31 : vector<8x128xi32>
    %c-1_i32 = arith.constant -1 : i32
    %33 = vector.broadcast %c-1_i32 : i32 to vector<8x1xi32>
    %34 = arith.cmpi ne, %30, %33 : vector<8x1xi32>
    %35 = vector.broadcast %34 : vector<8x1xi1> to vector<8x128xi1>
    %36 = arith.andi %32, %35 : vector<8x128xi1>
    %cst_11 = arith.constant 3.500000e-01 : f32
    %37 = vector.broadcast %cst_11 : f32 to vector<8x128xf32>
    %38 = arith.subf %25, %37 : vector<8x128xf32>
    %39 = arith.select %36, %38, %25 : vector<8x128xi1>, vector<8x128xf32>
    %cst_12 = arith.constant 6.400000e+01 : f32
    %40 = vector.broadcast %cst_12 : f32 to vector<8x128xf32>
    %41 = arith.mulf %39, %40 : vector<8x128xf32>
    %c0_13 = arith.constant 0 : index
    %c0_14 = arith.constant 0 : index
    %42 = vector.load %arg5[%c0_13, %c0_14] : memref<8x128xf32, #tpu.memory_space<vmem>>, vector<8x128xf32>
    tpu.vector_store %arg5[%c0_13, %c0_14], %41 {strides = array<i32>} : memref<8x128xf32, #tpu.memory_space<vmem>>, vector<8x128xf32>,
    return
  }
  func.func @transform_0(%arg0: i32, %arg1: i32) -> (i32, i32) {
    %c0_i32 = arith.constant 0 : i32
    %c0_i32_0 = arith.constant 0 : i32
    return %arg0, %c0_i32 : i32, i32
  }
  func.func @transform_1(%arg0: i32, %arg1: i32) -> (i32, i32) {
    %c0_i32 = arith.constant 0 : i32
    %c0_i32_0 = arith.constant 0 : i32
    return %c0_i32, %arg1 : i32, i32
  }
  func.func @transform_2(%arg0: i32, %arg1: i32) -> (i32, i32) {
    %c0_i32 = arith.constant 0 : i32
    %c0_i32_0 = arith.constant 0 : i32
    return %arg0, %c0_i32 : i32, i32
  }
  func.func @transform_3(%arg0: i32, %arg1: i32) -> (i32, i32) {
    %c0_i32 = arith.constant 0 : i32
    return %arg0, %arg1 : i32, i32
  }
}

</mosaic_0001>

<bundles_post_ra>
// kernel: tpu_custom_call.1
= control target key start
LH: loop header
LB: loop body
LE: loop exit
PB: predicated region body
PF: predicated region fallthrough
CT: control target
= control target key end

     0   :  { %8 = vsyncpa [#allocation3], 0  ;;  %s264_s0 = inlined_call_operand.vmem [shape: f32[8,32], index: 0, kind: input, shape index: {}]   ;;  %s265_s1 = inlined_call_operand.hbm [shape: bf16[32,128], index: 1, kind: input, shape index: {}]   ;;  %s266_s2 = inlined_call_operand.vmem [shape: s32[8,1], index: 2, kind: input, shape index: {}]   ;;  %s267_s3 = inlined_call_operand.hbm [shape: f32[8,128], index: 3, kind: output, shape index: {}]  }
   0x1   :  { %9 = vsyncpa [#allocation4], 0  ;;  %s16_s14 = sshll.u32 %s265_s1, 4  ;;  %s220_s15 = smov [#allocation2]   ;;  %s17_s14 = int_to_ptr.hbm [resolvable:$true] %s16_s14 }
   0x2   :  { %s18_s16 = sshll.u32 %s220_s15, 4  ;;  %s221_s17 = smov 64   ;;  %s19_s16 = int_to_ptr.vmem [resolvable:$true] %s18_s16 }
   0x3   :  { %s222_s18 = smov 4  }
   0x4   :  { %24 = dma.hbm_to_vmem [thread:$0]  %s17_s14, 256, %s19_s16, [#allocation3], %s221_s17, %s221_s17, %s222_s18  }
   0x5   :  { %216 = dma.done.wait [#allocation3], 256  }
   0x6   :  { %217 = vsyncadd [#allocation3], 4294967040  ;;  %v251_v0 = vld [vmem:[%s264_s0] sm:$0xff]  ;;  %vm34_vm0 = vcmask 261120   ;;  %v156_v6 = vld [vmem:[#allocation2 + $0x8] sm:$0xff]   ;;  %v223_v37 = vmov 0   ;;  %v108_v50 = vlaneseq }
   0x7   :  { %v33_v1 = vmul.f32 %v251_v0, %v251_v0  ;;  %v149_v3 = vld [vmem:[#allocation2] sm:$0xff]   ;;  %v154_v7 = vunpack.c.l.bf16 %v156_v6  ;;  %v155_v10 = vunpack.c.h.bf16 %v156_v6  ;;  %163 = vset.pattern.permute.xlu1 %v223_v37  ;;  %162 = vset.pattern.permute.xlu0 %v223_v37  ;;  %s135_s24 = sshll.u32 %s267_s3, 4  ;;  %s136_s24 = int_to_ptr.hbm [resolvable:$true] %s135_s24 }
   0x8   :  { %v150_v4 = vunpack.c.l.bf16 %v149_v3  ;;  %v151_v5 = vunpack.c.h.bf16 %v149_v3  ;;  %v112_v36 = vld [vmem:[%s266_s2] sm:$0xff]  ;;  %v109_v51 = vand.u32 127, %v108_v50  ;;  %s224_s2 = smov [#allocation5]  }
   0x9   :  { %v35_v2 = vsel %vm34_vm0, %v33_v1, 0.0  ;;  %v61_v11 = vmul.f32 %v154_v7, %v154_v7  ;;  %v62_v13 = vmul.f32 %v155_v10, %v155_v10  ;;  %vm117_vm4 = vcmp.ne.s32.totalorder %v112_v36, 4294967295  ;;  %s133_s21 = sshll.u32 %s224_s2, 4  ;;  %s134_s21 = int_to_ptr.vmem [resolvable:$true] %s133_s21 }
   0xa   :  { %36 = vadd.xlane.f32.xlu0 %v35_v2  ;;  %v59_v8 = vmul.f32 %v150_v4, %v150_v4  ;;  %v60_v9 = vmul.f32 %v151_v5, %v151_v5  ;;  %v118_v38 = vsel %vm117_vm4, 1, %v223_v37 }
   0xb   :  { %120 = vperm.xlu1 %163, %v118_v38  }
   0xc   :  { %v63_v12 = vadd.f32 %v60_v9, %v59_v8 }
   0xe   :  { %v64_v14 = vadd.f32 %v63_v12, %v61_v11 }
  0x10   :  { %v65_v15 = vadd.f32 %v64_v14, %v62_v13 }
  0x12   :  { %v66_v16 = vrot.slane %v65_v15, 4 }
  0x14   :  { %v67_v17 = vadd.f32 %v66_v16, %v65_v15 }
  0x16   :  { %v68_v18 = vrot.slane %v67_v17, 2 }
  0x18   :  { %v69_v19 = vadd.f32 %v68_v18, %v67_v17 }
  0x1a   :  { %v70_v20 = vrot.slane %v69_v19, 1 }
  0x1c   :  { %v71_v21 = vadd.f32 %v70_v20, %v69_v19 }
  0x1e   :  { %v72_v22 = vmax.f32 %v71_v21, 1e-12  ;;  %114 = vperm.xlu0 %162, %v112_v36  }
  0x20   :  { %164 = vrsqrt.f32 %v72_v22  ;;  %vm79_vm1 = vweird.f32 %v72_v22 }
  0x26   :  { %v165_v23 = vpop.eup %164 }
  0x27   :  { %v74_v24 = vmul.f32 %v165_v23, %v72_v22  ;;  %vm80_vm2 = vweird.f32 %v165_v23 }
  0x28   :  { %vm81_vm3 = vmor %vm79_vm1, %vm80_vm2 }
  0x29   :  { %v75_v25 = vmul.f32 %v165_v23, %v74_v24 }
  0x2b   :  { %v76_v26 = vmul.f32 0.5, %v75_v25 }
  0x2d   :  { %v77_v27 = vsub.f32 1.5, %v76_v26 }
  0x2f   :  { %v78_v28 = vmul.f32 %v165_v23, %v77_v27 }
  0x31   :  { %v82_v29 = vsel %vm81_vm3, %v165_v23, %v78_v28 }
  0x32   :  { %v85_v30 = vmul.f32 %v154_v7, %v82_v29  ;;  %v86_v31 = vmul.f32 %v155_v10, %v82_v29  ;;  %v83_v33 = vmul.f32 %v150_v4, %v82_v29  ;;  %v84_v34 = vmul.f32 %v151_v5, %v82_v29 }
  0x34   :  { %v88_v32 = vpack.c.bf16 %v86_v31, %v85_v30  ;;  %v87_v35 = vpack.c.bf16 %v84_v34, %v83_v33 }
  0x36   :  { %98 = vmatpush.bf16.msra.mxu0 %v88_v32 }
  0x3a   :  { %99 = vmatpush.bf16.msra.mxu0 %v87_v35 }
  0x7d   :  { %v37_v39 = vpop.xlane.xlu0 %36  ;;  %v121_v52 = vpop.permute.xlu1 %120 }
  0x7e   :  { %v38_v40 = vmax.f32 %v37_v39, 1e-12  ;;  %vm122_vm8 = vcmp.eq.s32.totalorder %v121_v52, 1 }
  0x80   :  { %166 = vrsqrt.f32 %v38_v40  ;;  %vm45_vm6 = vweird.f32 %v38_v40 }
  0x86   :  { %v167_v41 = vpop.eup %166 }
  0x87   :  { %v40_v42 = vmul.f32 %v167_v41, %v38_v40  ;;  %vm46_vm5 = vweird.f32 %v167_v41 }
  0x88   :  { %vm47_vm7 = vmor %vm45_vm6, %vm46_vm5 }
  0x89   :  { %v41_v43 = vmul.f32 %v167_v41, %v40_v42 }
  0x8b   :  { %v42_v44 = vmul.f32 0.5, %v41_v43 }
  0x8d   :  { %v43_v45 = vsub.f32 1.5, %v42_v44 }
  0x8f   :  { %v44_v46 = vmul.f32 %v167_v41, %v43_v45 }
  0x90   :  { %v115_v53 = vpop.permute.xlu0 %114 }
  0x91   :  { %v48_v47 = vsel %vm47_vm7, %v167_v41, %v44_v46  ;;  %vm116_vm9 = vcmp.eq.s32.totalorder %v109_v51, %v115_v53 }
  0x92   :  { %v49_v48 = vmul.f32 %v48_v47, %v251_v0  ;;  %vm123_vm10 = vmand %vm116_vm9, %vm122_vm8 }
  0x94   :  { %v50_v49 = vpack.c.bf16 %v49_v48, %v49_v48 }
  0x96   :  { %145 = vmatmul.msk.bf16.vlgmr.msra.gmra.mxu0 %vm34_vm0, %v50_v49 }
 0x113   :  { %v101_v54 = vpop.f32.mrf.mxu0 }
 0x114   :  { %v146_v55 = vclamps-f32 %v101_v54, 1.0 }
 0x116   :  { %v147_v56 = vadd.f32 -0.35, %v146_v55 }
 0x118   :  { %v125_v57 = vsel %vm123_vm10, %v147_v56, %v146_v55 }
 0x119   :  { %v126_v58 = vmul.f32 64.0, %v125_v57 }
 0x11b   :  { %127 = vst [vmem:[#allocation5] sm:$0xff] %v126_v58  ;;  %v103_v59 = vpop.f32.mrf.mxu0 }
 0x11c   :  { %138 = dma.vmem_to_hbm [thread:$0]  %s134_s21, 128, %s136_s24, [#allocation4]  }
 0x11d   :  { %218 = dma.done.wait [#allocation4], 128  }
 0x11e   :  { %219 = vsyncadd [#allocation4], 4294967168 }
 0x11f   :  { %143 = vsyncpa [#allocation3], 1 }
 0x120   :  { %144 = vsyncpa [#allocation4], 1 }

</bundles_post_ra>
